<compile_context>
chip_gen: v7x
topology: tpu7x:2x2x1
jax: 0.10.0
libtpu: 0.0.40
codegen_flags: <defaults>
</compile_context>

<pallas_src>
import functools

import jax
import jax.numpy as jnp
from jax.experimental import pallas as pl
from jax.experimental.pallas import tpu as pltpu


def _round_up(x, m):
    return (x + m - 1) // m * m


def _expert_tile_kernel(tile_expert_ref, x_ref, g_ref, w_ref, b_ref, o_ref):
    """One grouped-matmul tile.

    All rows of this tile are routed to the same expert (tokens are sorted by
    expert and each group is padded to a tile multiple on the host side); the
    expert id arrives via scalar prefetch and selects the (1, D, D) weight block
    through the BlockSpec index_map, so only that expert's weights are in VMEM.
    Padding rows carry gate == 0, so they contribute nothing.
    """
    del tile_expert_ref  # consumed by the BlockSpec index_maps only
    # bf16 MXU matmul with f32 accumulation.
    y = jnp.dot(x_ref[...], w_ref[0], preferred_element_type=jnp.float32)
    y = y + b_ref[0]                               # (tt, D) + (1, D)
    # Fold the top-1 gate into the output store (single VPU multiply + cast).
    o_ref[...] = (g_ref[...] * y).astype(o_ref.dtype)


@functools.partial(jax.jit, static_argnames=("token_tile",))
def moe_forward(x, wr, br, we, be, *, token_tile=512):
    """x: [B, S, D] float32. Returns (output [B, S, D], aux_loss scalar)."""
    B, S, D = x.shape
    E = wr.shape[1]
    T = B * S
    xf = x.reshape(T, D)

    # ---- Router: tiny (T, D) @ (D, E) matmul; stays in XLA / f32 (bit-exact top-1). --
    logits = xf @ wr + br[0]                                     # (T, E) f32
    probs = jax.nn.softmax(logits, axis=-1)
    gate = jnp.max(probs, axis=-1)                               # (T,) top-1 prob
    idx = jnp.argmax(logits, axis=-1).astype(jnp.int32)          # (T,) top-1 expert

    # ---- Sorted / grouped token layout (megablocks-style dispatch). -----------------
    # Token tile: multiple of 16 (bf16 sublane pack), never padding a tiny input
    # beyond a single aligned tile.
    tt = _round_up(min(token_tile, _round_up(T, 16)), 16)
    # Worst-case capacity: every non-empty group wastes < tt rows of padding.
    cap = _round_up(T, tt) + E * tt
    num_tiles = cap // tt                                        # always >= E + 1 >= 2

    one_hot = (idx[:, None] == jnp.arange(E, dtype=jnp.int32)[None, :]).astype(jnp.int32)
    counts = jnp.sum(one_hot, axis=0)                            # (E,) tokens per expert
    padded_counts = ((counts + tt - 1) // tt) * tt               # per-group tile padding
    group_ends = jnp.cumsum(padded_counts)                       # (E,)
    group_starts = group_ends - padded_counts                    # exclusive cumsum
    # Rank of each token within its expert group (stable / original order).
    rank = jnp.take_along_axis(jnp.cumsum(one_hot, axis=0) - one_hot,
                               idx[:, None], axis=1)[:, 0]
    pos = (group_starts[idx] + rank).astype(jnp.int32)           # destination rows

    # Dispatch: scatter tokens (bf16 — halves kernel DMA bytes) and gates into the
    # grouped layout.  Unused rows stay zero with gate 0.
    x_sorted = jnp.zeros((cap, D), jnp.bfloat16).at[pos].set(
        xf.astype(jnp.bfloat16), unique_indices=True)
    gate_sorted = jnp.zeros((cap, 1), jnp.float32).at[pos].set(
        gate[:, None], unique_indices=True)

    # Expert id of each tile (tiles past all real groups clamp to E-1; their rows have
    # gate 0, so the extra matmul result is discarded).
    tile_starts = jnp.arange(num_tiles, dtype=jnp.int32) * tt
    tile_expert = jnp.minimum(
        jnp.sum((tile_starts[:, None] >= group_ends[None, :]).astype(jnp.int32), axis=1),
        E - 1).astype(jnp.int32)

    we_bf16 = we.astype(jnp.bfloat16)

    # ---- VMEM budget: double-buffered streamed blocks + headroom, per-generation cap.
    needed = 2 * (tt * D * 2       # x tile (bf16)
                  + tt * 4         # gate tile (f32)
                  + D * D * 2      # one expert weight (bf16)
                  + D * 4          # one expert bias (f32)
                  + tt * D * 4)    # output tile (f32)
    try:
        vmem_cap = int(pltpu.get_tpu_info().vmem_capacity_bytes)
    except Exception:
        vmem_cap = 64 * 1024 * 1024      # conservative (v7x physical VMEM)
    vmem_limit = int(min(max(2 * needed, 32 * 1024 * 1024), int(0.85 * vmem_cap)))

    # ---- Grouped expert matmul kernel: one MXU matmul per token tile. ---------------
    out_sorted = pl.pallas_call(
        _expert_tile_kernel,
        out_shape=jax.ShapeDtypeStruct((cap, D), jnp.float32),
        grid_spec=pltpu.PrefetchScalarGridSpec(
            num_scalar_prefetch=1,                      # tile_expert -> SMEM
            grid=(num_tiles,),
            in_specs=[
                pl.BlockSpec((tt, D), lambda i, te: (i, 0)),           # grouped tokens
                pl.BlockSpec((tt, 1), lambda i, te: (i, 0)),           # grouped gates
                pl.BlockSpec((1, D, D), lambda i, te: (te[i], 0, 0)),  # this tile's W_e
                pl.BlockSpec((1, 1, D), lambda i, te: (te[i], 0, 0)),  # this tile's b_e
            ],
            out_specs=pl.BlockSpec((tt, D), lambda i, te: (i, 0)),
        ),
        compiler_params=pltpu.CompilerParams(
            dimension_semantics=("parallel",),
            vmem_limit_bytes=vmem_limit),
    )(tile_expert, x_sorted, gate_sorted, we_bf16, be)

    # Combine: gather each token's row back into original order.
    out = out_sorted[pos].reshape(B, S, D).astype(x.dtype)

    # Switch-transformer style load-balancing aux loss over real tokens.
    frac = jnp.mean(one_hot.astype(jnp.float32), axis=0)
    mean_probs = jnp.mean(probs, axis=0)
    aux_loss = E * jnp.sum(frac * mean_probs)

    return out, aux_loss


def _ref_forward(x, wr, br, we, be):
    """Pure-JAX reference of the same top-1 MoE math (bf16 experts, f32 router)."""
    B, S, D = x.shape
    E = wr.shape[1]
    xf = x.reshape(-1, D)
    logits = xf @ wr + br[0]
    probs = jax.nn.softmax(logits, axis=-1)
    idx = jnp.argmax(logits, axis=-1)
    gate = jnp.max(probs, axis=-1)
    xb = xf.astype(jnp.bfloat16)
    wb = we.astype(jnp.bfloat16)
    y = jnp.einsum("td,edh->teh", xb, wb,
                   preferred_element_type=jnp.float32) + be[:, 0][None, :, :]
    sel = jnp.take_along_axis(y, idx[:, None, None], axis=1)[:, 0]
    out = sel * gate[:, None]
    return out.reshape(B, S, D)


def init_params(key, embed_dim, num_experts):
    k1, k2, k3, k4 = jax.random.split(key, 4)
    wr = jax.random.normal(k1, (embed_dim, num_experts), jnp.float32) * 0.05
    br = jax.random.normal(k2, (1, num_experts), jnp.float32) * 0.05
    # expert weights: [E, D_in, D_out], biases: [E, 1, D_out]
    we = jax.random.normal(k3, (num_experts, embed_dim, embed_dim), jnp.float32) * 0.05
    be = jax.random.normal(k4, (num_experts, 1, embed_dim), jnp.float32) * 0.05
    return wr, br, we, be


if __name__ == "__main__":
    # Small shapes consistent with the module's forward: x is [batch, seq, embed_dim]
    batch, seq, embed_dim, num_experts = 2, 8, 32, 4

    key = jax.random.PRNGKey(0)
    kx, kp = jax.random.split(key)
    x = jax.random.normal(kx, (batch, seq, embed_dim), jnp.float32)
    wr, br, we, be = init_params(kp, embed_dim, num_experts)

    out, aux_loss = moe_forward(x, wr, br, we, be)
    out = jax.block_until_ready(out)
    aux_loss = jax.block_until_ready(aux_loss)

    ref = _ref_forward(x, wr, br, we, be)
    assert out.shape == (batch, seq, embed_dim)
    assert jnp.allclose(out, ref, atol=1e-3, rtol=1e-3), "mismatch vs reference"
    assert bool(jnp.isfinite(aux_loss))

    print("KERNEL_OK")
</pallas_src>

<mosaic_0001>
module attributes {stable_mosaic.version = 11 : i64} {
  func.func @_expert_tile_kernel(%arg0: i32, %arg1: memref<5xi32, #tpu.memory_space<smem>>, %arg2: memref<16x32xbf16, #tpu.memory_space<vmem>>, %arg3: memref<16x1xf32, #tpu.memory_space<vmem>>, %arg4: memref<1x32x32xbf16, #tpu.memory_space<vmem>>, %arg5: memref<1x1x32xf32, #tpu.memory_space<vmem>>, %arg6: memref<16x32xf32, #tpu.memory_space<vmem>>) attributes {dimension_semantics = [#tpu.dimension_semantics<parallel>], iteration_bounds = array<i64: 5>, scalar_prefetch = 1 : i64, scratch_operands = 0 : i64, tpu.core_type = #tpu.core_type<tc>, window_params = [{transform_indices = @transform_0, window_bounds = array<i64: 16, 32>}, {transform_indices = @transform_1, window_bounds = array<i64: 16, 1>}, {transform_indices = @transform_2, window_bounds = array<i64: 1, 32, 32>}, {transform_indices = @transform_3, window_bounds = array<i64: 1, 1, 32>}, {transform_indices = @transform_4, window_bounds = array<i64: 16, 32>}]} {
    %c0 = arith.constant 0 : index
    %c0_0 = arith.constant 0 : index
    %0 = vector.load %arg2[%c0, %c0_0] : memref<16x32xbf16, #tpu.memory_space<vmem>>, vector<16x32xbf16>
    %c0_1 = arith.constant 0 : index
    %c0_2 = arith.constant 0 : index
    %c0_3 = arith.constant 0 : index
    %1 = vector.load %arg4[%c0_1, %c0_2, %c0_3] : memref<1x32x32xbf16, #tpu.memory_space<vmem>>, vector<1x32x32xbf16>
    %2 = vector.shape_cast %1 : vector<1x32x32xbf16> to vector<32x32xbf16>
    %cst = arith.constant dense<0.000000e+00> : vector<16x32xf32>
    %3 = tpu.matmul %0, %2, %cst {dimension_numbers = #tpu.dot_dimension_numbers<[1], [0], [0], [1], [0, 0, 1, 1], [], []>} : vector<16x32xbf16>, vector<32x32xbf16>, vector<16x32xf32> -> vector<16x32xf32>
    %c0_4 = arith.constant 0 : index
    %c0_5 = arith.constant 0 : index
    %c0_6 = arith.constant 0 : index
    %4 = vector.load %arg5[%c0_4, %c0_5, %c0_6] : memref<1x1x32xf32, #tpu.memory_space<vmem>>, vector<1x1x32xf32>
    %5 = vector.shape_cast %4 : vector<1x1x32xf32> to vector<1x32xf32>
    %6 = vector.broadcast %5 : vector<1x32xf32> to vector<16x32xf32>
    %7 = arith.addf %3, %6 : vector<16x32xf32>
    %c0_7 = arith.constant 0 : index
    %c0_8 = arith.constant 0 : index
    %8 = vector.load %arg3[%c0_7, %c0_8] : memref<16x1xf32, #tpu.memory_space<vmem>>, vector<16x1xf32>
    %9 = vector.broadcast %8 : vector<16x1xf32> to vector<16x32xf32>
    %10 = arith.mulf %9, %7 : vector<16x32xf32>
    %c0_9 = arith.constant 0 : index
    %c0_10 = arith.constant 0 : index
    %11 = vector.load %arg6[%c0_9, %c0_10] : memref<16x32xf32, #tpu.memory_space<vmem>>, vector<16x32xf32>
    tpu.vector_store %arg6[%c0_9, %c0_10], %10 {strides = array<i32>} : memref<16x32xf32, #tpu.memory_space<vmem>>, vector<16x32xf32>,
    return
  }
  func.func @transform_0(%arg0: i32, %arg1: memref<5xi32, #tpu.memory_space<smem>>) -> (i32, i32) {
    %c0_i32 = arith.constant 0 : i32
    %c0_i32_0 = arith.constant 0 : i32
    return %arg0, %c0_i32 : i32, i32
  }
  func.func @transform_1(%arg0: i32, %arg1: memref<5xi32, #tpu.memory_space<smem>>) -> (i32, i32) {
    %c0_i32 = arith.constant 0 : i32
    %c0_i32_0 = arith.constant 0 : i32
    return %arg0, %c0_i32 : i32, i32
  }
  func.func @transform_2(%arg0: i32, %arg1: memref<5xi32, #tpu.memory_space<smem>>) -> (i32, i32, i32) {
    %0 = arith.index_cast %arg0 : i32 to index
    %1 = memref.load %arg1[%0] : memref<5xi32, #tpu.memory_space<smem>>
    %c0_i32 = arith.constant 0 : i32
    %c0_i32_0 = arith.constant 0 : i32
    %c0_i32_1 = arith.constant 0 : i32
    return %1, %c0_i32, %c0_i32_0 : i32, i32, i32
  }
  func.func @transform_3(%arg0: i32, %arg1: memref<5xi32, #tpu.memory_space<smem>>) -> (i32, i32, i32) {
    %0 = arith.index_cast %arg0 : i32 to index
    %1 = memref.load %arg1[%0] : memref<5xi32, #tpu.memory_space<smem>>
    %c0_i32 = arith.constant 0 : i32
    %c0_i32_0 = arith.constant 0 : i32
    %c0_i32_1 = arith.constant 0 : i32
    return %1, %c0_i32, %c0_i32_0 : i32, i32, i32
  }
  func.func @transform_4(%arg0: i32, %arg1: memref<5xi32, #tpu.memory_space<smem>>) -> (i32, i32) {
    %c0_i32 = arith.constant 0 : i32
    %c0_i32_0 = arith.constant 0 : i32
    return %arg0, %c0_i32 : i32, i32
  }
}

</mosaic_0001>

<bundles_post_ra>
// kernel: moe_forward.1
= control target key start
LH: loop header
LB: loop body
LE: loop exit
PB: predicated region body
PF: predicated region fallthrough
CT: control target
= control target key end

     0   :  { %s604_s0 = inlined_call_operand.vmem [shape: s32[5], index: 0, kind: input, shape index: {}]   ;;  %s605_s1 = inlined_call_operand.vmem [shape: bf16[80,32], index: 1, kind: input, shape index: {}]   ;;  %s606_s2 = inlined_call_operand.vmem [shape: f32[80,1], index: 2, kind: input, shape index: {}]   ;;  %s607_s3 = inlined_call_operand.vmem [shape: bf16[4,32,32], index: 3, kind: input, shape index: {}]   ;;  %s608_s4 = inlined_call_operand.vmem [shape: f32[4,1,32], index: 4, kind: input, shape index: {}]   ;;  %s609_s5 = inlined_call_operand.vmem [shape: f32[80,32], index: 5, kind: output, shape index: {}]  }
   0x1   :  { %s10_s20 = sshll.u32 %s604_s0, 4  ;;  %s11_s20 = int_to_ptr.vmem [resolvable:$true] %s10_s20 }
   0x2   :  { %s507_s21 = scalar_lea.vmem %s11_s20, 16  ;;  %p512_p1 = scmp.lt.s32.totalorder %s11_s20, %s11_s20 }
   0x3   :  { %p508_p0 = scmp.ne.s32.totalorder %s11_s20, %s507_s21  ;;  %p513_p2 = scmp.lt.s32.totalorder %s507_s21, %s507_s21 }
   0x5   :  { %p514_p3 = por %p513_p2, %p512_p1 }
   0x7   :  { %p515_p4 = pnand %p514_p3, %p508_p0 }
   0x9   :  { %518 = shalt.err (!%p515_p4)  }
   0xa   :  { %s529_s22 = smov [#allocation3]  }
   0xb   :  { %13 = dma.vmem_to_smem %s11_s20, 16, %s529_s22, [#allocation2] }
   0xc   :  { %523 = dma.done.wait [#allocation2], 16 }
   0xd   :  { %524 = vsyncadd [#allocation2], 4294967280 }
   0xe   :  { %15 = sfence }
   0xf   :  { %s566_s23 = smov 0  }
  0x10 LB: > { %s572_s0 = sadd.s32 4294967295, %s527_s23   ;;  %p463_p5 = scmp.ge.s32.totalorder %s527_s23, 1  ;;  %s527_s23 = sphi %s566_s23, %s21_s23  }
  0x11   : > { %p207_p6 = scmp.lt.s32.totalorder %s527_s23, 6 }
  0x13   : > { %p208_p7 = pnand %p463_p5, %p207_p6 }
  0x14   : > { %s260_s24 = sld [smem:[#allocation3 + %s572_s0]] (!%p208_p7)  ;;  %s464_s25 = sshll.u32 (!%p208_p7), %s572_s0, 1  ;;  %v530_v0 = vmov (!%p208_p7), 0.0   ;;  %vm531_vm0 = vmmov (!%p208_p7), 0   ;;  %v532_v1 = vmov (!%p208_p7), 0   ;;  %vm309_vm1 = vcmask (!%p208_p7), 261120  }
  0x15   : > { %211 = sbr.rel (%p208_p7) target bundleno = 260 (0x104), region = 36  ;;  %483 = vmatprep.subr.bf16.mxu0 (!%p208_p7), %v530_v0  ;;  %487 = vmatprep.mubr.msk.bf16.mxu0 (!%p208_p7), %vm531_vm0, %v530_v0  ;;  %p249_p8 = scmp.lt.s32.totalorder (!%p208_p7), %s464_s25, 9 }
  0x16   : > { %503 = vset.pattern.permute.xlu0 (!%p208_p7), %v532_v1  ;;  %s267_s13 = sld [smem:[#allocation3 + %s572_s0]] (!%p208_p7) }
  0x1a   : > { %p261_p9 = scmp.lt.s32.totalorder (!%p208_p7), %s260_s24, 3 }
  0x1c   : > { %s611_s25 = smov (!%p249_p8, %s464_s25), 9  ;;  %s613_s24 = smov (!%p261_p9, %s260_s24), 3 }
  0x1d   : > { %s465_s26 = sshll.u32 %s611_s25, 2  ;;  %s467_s27 = sshll.u32 %s611_s25, 3 }
  0x1e   : > { %s252_s30 = scalar_lea.vmem %s605_s1, %s465_s26  ;;  %s258_s8 = scalar_lea.vmem %s606_s2, %s467_s27 }
  0x1f   : > { %v354_v2 = vld [vmem:[%s258_s8] sm:$0xff]  ;;  %s479_s9 = sshll.u32 %s613_s24, 4  ;;  %v355_v3 = vld [vmem:[%s258_s8 + $0x8] sm:$0xff]  ;;  %p268_p10 = scmp.lt.s32.totalorder %s267_s13, 3 }
  0x20   : > { %358 = vperm.xlu0 %503, %v354_v2   ;;  %s265_s12 = scalar_lea.vmem %s607_s3, %s479_s9  ;;  %v506_v6 = vld [vmem:[%s252_s30] sm:$0xff]   ;;  %s276_s19 = scalar_lea.vmem %s609_s5, %s467_s27 }
  0x21   : > { %v504_v4 = vld [vmem:[%s265_s12] sm:$0xff]   ;;  %v505_v5 = vld [vmem:[%s265_s12 + $0x8] sm:$0xff]   ;;  %s615_s13 = smov (!%p268_p10, %s267_s13), 3 }
  0x22   : > { %484 = vmatpush3.bf16.msra.mxu0 %v504_v4  ;;  %s270_s16 = scalar_lea.vmem %s608_s4, %s615_s13 }
  0x23   : > { %485 = vmatprep.subr.bf16.mxu0 %v530_v0  ;;  %v472_v8 = vld [vmem:[%s270_s16] ss:$0 sm:$0xff] }
  0x24   : > { %363 = vperm.xlu0 %503, %v355_v3  }
  0x26   : > { %486 = vmatpush3.bf16.msra.mxu0 %v505_v5 }
  0x29   : > { %488 = vmatmul.mubr.msk.bf16.vlgmr.msra.gmra.mrb[0].mxu0 %vm309_vm1, %v506_v6 }
  0x9f   : > { %v359_v7 = vpop.permute.xlu0 %358 }
  0xa3   : > { %v364_v16 = vpop.permute.xlu0 %363 }
  0xfc   : > { %v347_v9 = vpop.f32.mrb[0].mxu0 }
  0xfd   : > { %v348_v10 = vadd.f32 %v472_v8, %v347_v9  ;;  %v489_v11 = vpop.f32.mrb[1].mxu0 }
  0xfe   : > { %v350_v12 = vpop.f32.mrb[2].mxu0 }
  0xff   : > { %v366_v13 = vmul.f32 %v359_v7, %v348_v10  ;;  %v351_v14 = vadd.f32 %v472_v8, %v350_v12  ;;  %v490_v15 = vpop.f32.mrb[3].mxu0 }
 0x101   : > { %368 = vst.msk [vmem:[%s276_s19] sm:$0xff] %vm309_vm1, %v366_v13  ;;  %v367_v17 = vmul.f32 %v364_v16, %v351_v14 }
 0x103   : > { %369 = vst.msk [vmem:[%s276_s19 + $0x8] sm:$0xff] %vm309_vm1, %v367_v17 }
 0x104 PF: > { %s21_s23 = sadd.s32 1, %s527_s23  }
 0x105   : > { %p18_p11 = scmp.ge.s32.totalorder %s21_s23, 7  }
 0x107   :  { %20 = sbr.rel (!%p18_p11) target bundleno = 16 (0x10), region = 75 }

</bundles_post_ra>
